<compile_context>
chip_gen: v5e
topology: v5e:2x2
jax: 0.10.0
libtpu: 0.0.40
codegen_flags: <defaults>
</compile_context>

<pallas_src>
import functools

import jax
import jax.numpy as jnp
from jax.experimental import pallas as pl
from jax.experimental.pallas import tpu as pltpu

_MIB = 1 << 20


def _se_kernel(x_ref, w1_ref, b1_ref, w2_ref, b2_ref, o_ref):
    # --- squeeze: global average pool over the (un-padded) spatial axis ---
    pooled = jnp.mean(x_ref[...].astype(jnp.float32), axis=-1)          # (Bt, C)
    # --- excitation MLP: Linear -> ReLU -> Linear -> Sigmoid (f32) ---
    h = jnp.dot(pooled, w1_ref[...].astype(jnp.float32),
                preferred_element_type=jnp.float32)
    h = jnp.maximum(h + b1_ref[...].astype(jnp.float32), 0.0)           # (Bt, Cr)
    y = jnp.dot(h, w2_ref[...].astype(jnp.float32),
                preferred_element_type=jnp.float32)
    y = jax.nn.sigmoid(y + b2_ref[...].astype(jnp.float32))             # (Bt, C)
    # --- scale: re-read the input window (keeps the big block out of long
    #     live ranges, exact VMEM accounting) and store in the input dtype ---
    o_ref[...] = (x_ref[...] * y[:, :, None].astype(x_ref.dtype)).astype(o_ref.dtype)


@functools.lru_cache(maxsize=1)
def _hw_params():
    """Returns (vmem_budget_cap, per_block_cap, split_for_two_cores).

    Conservative (v7x-safe) defaults if the hardware query is unavailable.
    """
    vmem_cap = None
    try:
        vmem_cap = pltpu.get_tpu_info().vmem_capacity_bytes
    except Exception:
        vmem_cap = None
    if vmem_cap is not None and vmem_cap > 100 * _MIB:
        # v5e / v6e: 128 MiB VMEM, single TensorCore -> few fat grid steps.
        return 96 * _MIB, 24 * _MIB, False
    # v7x (or unknown): 64 MiB VMEM, 2 TensorCores -> headroom + grid split.
    return 48 * _MIB, 10 * _MIB, True


def _divisors_desc(n):
    return [d for d in range(n, 0, -1) if n % d == 0]


def _pick_batch_tile(B, bytes_per_batch, *, block_cap, two_core_split,
                     min_split=256 * 1024):
    """Largest Bt dividing B with Bt*bytes_per_batch <= block_cap; on 2-TC
    parts prefer >=2 (even) grid steps while keeping blocks >= min_split."""
    bt = 1
    for d in _divisors_desc(B):
        if d * bytes_per_batch <= block_cap:
            bt = d
            break
    if not two_core_split or B < 2:
        return bt
    cands = [d for d in _divisors_desc(B)
             if d <= bt and B // d >= 2 and d * bytes_per_batch >= min_split]
    if not cands:
        cands = [d for d in _divisors_desc(B) if d <= bt and B // d >= 2]
    if not cands:
        return bt
    even = [d for d in cands if (B // d) % 2 == 0]
    return (even or cands)[0]


@jax.jit
def se_block(x, w1, b1, w2, b2):
    """x: (B, C, H, W); w1: (C, Cr); b1: (1, Cr); w2: (Cr, C); b2: (1, C)."""
    B, C, H, W = x.shape
    HW = H * W
    Cr = w1.shape[1]
    itemsize = jnp.dtype(x.dtype).itemsize

    # (B, C, HW): spatial flattened onto the lane axis.  No padding -- block
    # last-two dims equal the full array dims, so this is legal for any HW and
    # avoids an extra full read+write of x / out for pad+crop.
    x_flat = x.reshape(B, C, HW)

    vmem_budget_cap, block_cap, two_core_split = _hw_params()
    bytes_per_batch = C * HW * itemsize
    Bt = _pick_batch_tile(B, bytes_per_batch, block_cap=block_cap,
                          two_core_split=two_core_split)
    block_bytes = Bt * bytes_per_batch
    weight_bytes = (2 * C * Cr + C + Cr) * jnp.dtype(w1.dtype).itemsize
    # Peak VMEM ~ double-buffered in + out blocks + resident weights + slack.
    vmem_limit = int(min(vmem_budget_cap,
                         max(16 * _MIB, 4 * block_bytes + weight_bytes + 4 * _MIB)))
    # TODO(synk): if even Bt=1 exceeds block_cap (huge C*HW on v7x), switch to
    # a two-pass pool-kernel -> tiny MLP -> scale-kernel split; kept fused
    # here since realistic SE shapes fit comfortably.

    cost = pl.CostEstimate(
        flops=3 * B * C * HW + 4 * B * C * Cr,
        transcendentals=B * C,
        bytes_accessed=2 * B * C * HW * itemsize + weight_bytes,
    )

    out_flat = pl.pallas_call(
        _se_kernel,
        out_shape=jax.ShapeDtypeStruct((B, C, HW), x.dtype),
        grid_spec=pltpu.PrefetchScalarGridSpec(
            num_scalar_prefetch=0,
            grid=(B // Bt,),
            in_specs=[
                pl.BlockSpec((Bt, C, HW), lambda b: (b, 0, 0)),
                pl.BlockSpec((C, Cr), lambda b: (0, 0)),   # weights: constant
                pl.BlockSpec((1, Cr), lambda b: (0, 0)),   # index_map -> stay
                pl.BlockSpec((Cr, C), lambda b: (0, 0)),   # resident in VMEM
                pl.BlockSpec((1, C), lambda b: (0, 0)),
            ],
            out_specs=pl.BlockSpec((Bt, C, HW), lambda b: (b, 0, 0)),
        ),
        compiler_params=pltpu.CompilerParams(
            dimension_semantics=("parallel",),
            vmem_limit_bytes=vmem_limit),
        cost_estimate=cost,
    )(x_flat, w1, b1, w2, b2)

    return out_flat.reshape(B, C, H, W)


def _reference(x, w1, b1, w2, b2):
    pooled = jnp.mean(x, axis=(2, 3))                       # (B, C)
    h = jnp.maximum(pooled @ w1 + b1, 0.0)                  # (B, Cr)
    y = jax.nn.sigmoid(h @ w2 + b2)                         # (B, C)
    return x * y[:, :, None, None]


if __name__ == "__main__":
    # Small shapes consistent with the module: reduction=16 requires C >= 16.
    B, C, H, W = 2, 64, 16, 16
    reduction = 16
    Cr = C // reduction

    key = jax.random.PRNGKey(0)
    kx, k1, k2, k3, k4 = jax.random.split(key, 5)

    x = jax.random.normal(kx, (B, C, H, W), dtype=jnp.float32)

    # nn.Linear(C, Cr): weight (Cr, C), bias (Cr,).  Store the transposed
    # weight so the kernel does pooled @ W1 directly.
    w1 = (jax.random.normal(k1, (Cr, C), dtype=jnp.float32) * 0.05).T   # (C, Cr)
    b1 = (jax.random.normal(k2, (Cr,), dtype=jnp.float32) * 0.05).reshape(1, Cr)
    w2 = (jax.random.normal(k3, (C, Cr), dtype=jnp.float32) * 0.05).T   # (Cr, C)
    b2 = (jax.random.normal(k4, (C,), dtype=jnp.float32) * 0.05).reshape(1, C)

    out = se_block(x, w1, b1, w2, b2)
    out = jax.block_until_ready(out)

    ref = _reference(x, w1, b1, w2, b2)
    assert out.shape == (B, C, H, W)
    assert jnp.allclose(out, ref, atol=1e-5, rtol=1e-5)

    print("KERNEL_OK")
</pallas_src>

<mosaic_0001>
module attributes {stable_mosaic.version = 11 : i64} {
  func.func @_se_kernel(%arg0: i32, %arg1: memref<1x64x256xf32, #tpu.memory_space<vmem>>, %arg2: memref<64x4xf32, #tpu.memory_space<vmem>>, %arg3: memref<1x4xf32, #tpu.memory_space<vmem>>, %arg4: memref<4x64xf32, #tpu.memory_space<vmem>>, %arg5: memref<1x64xf32, #tpu.memory_space<vmem>>, %arg6: memref<1x64x256xf32, #tpu.memory_space<vmem>>) attributes {dimension_semantics = [#tpu.dimension_semantics<parallel>], iteration_bounds = array<i64: 2>, scalar_prefetch = 0 : i64, scratch_operands = 0 : i64, tpu.core_type = #tpu.core_type<tc>, window_params = [{transform_indices = @transform_0, window_bounds = array<i64: 1, 64, 256>}, {pipeline_mode = #tpu.pipeline_mode<synchronous>, transform_indices = @transform_1, window_bounds = array<i64: 64, 4>}, {pipeline_mode = #tpu.pipeline_mode<synchronous>, transform_indices = @transform_2, window_bounds = array<i64: 1, 4>}, {pipeline_mode = #tpu.pipeline_mode<synchronous>, transform_indices = @transform_3, window_bounds = array<i64: 4, 64>}, {pipeline_mode = #tpu.pipeline_mode<synchronous>, transform_indices = @transform_4, window_bounds = array<i64: 1, 64>}, {transform_indices = @transform_5, window_bounds = array<i64: 1, 64, 256>}]} {
    %c0 = arith.constant 0 : index
    %c0_0 = arith.constant 0 : index
    %c0_1 = arith.constant 0 : index
    %0 = vector.load %arg1[%c0, %c0_0, %c0_1] : memref<1x64x256xf32, #tpu.memory_space<vmem>>, vector<1x64x256xf32>
    %cst = arith.constant dense<0.000000e+00> : vector<1x64xf32>
    %1 = vector.multi_reduction <add>, %0, %cst [2] : vector<1x64x256xf32> to vector<1x64xf32>
    %cst_2 = arith.constant 2.560000e+02 : f32
    %2 = vector.broadcast %cst_2 : f32 to vector<1x64xf32>
    %3 = arith.divf %1, %2 : vector<1x64xf32>
    %c0_3 = arith.constant 0 : index
    %c0_4 = arith.constant 0 : index
    %4 = vector.load %arg2[%c0_3, %c0_4] : memref<64x4xf32, #tpu.memory_space<vmem>>, vector<64x4xf32>
    %cst_5 = arith.constant dense<0.000000e+00> : vector<1x4xf32>
    %5 = tpu.matmul %3, %4, %cst_5 {dimension_numbers = #tpu.dot_dimension_numbers<[1], [0], [0], [1], [0, 0, 1, 1], [], []>} : vector<1x64xf32>, vector<64x4xf32>, vector<1x4xf32> -> vector<1x4xf32>
    %c0_6 = arith.constant 0 : index
    %c0_7 = arith.constant 0 : index
    %6 = vector.load %arg3[%c0_6, %c0_7] : memref<1x4xf32, #tpu.memory_space<vmem>>, vector<1x4xf32>
    %7 = arith.addf %5, %6 : vector<1x4xf32>
    %cst_8 = arith.constant 0.000000e+00 : f32
    %8 = vector.broadcast %cst_8 : f32 to vector<1x4xf32>
    %9 = arith.maximumf %7, %8 : vector<1x4xf32>
    %c0_9 = arith.constant 0 : index
    %c0_10 = arith.constant 0 : index
    %10 = vector.load %arg4[%c0_9, %c0_10] : memref<4x64xf32, #tpu.memory_space<vmem>>, vector<4x64xf32>
    %cst_11 = arith.constant dense<0.000000e+00> : vector<1x64xf32>
    %11 = tpu.matmul %9, %10, %cst_11 {dimension_numbers = #tpu.dot_dimension_numbers<[1], [0], [0], [1], [0, 0, 1, 1], [], []>} : vector<1x4xf32>, vector<4x64xf32>, vector<1x64xf32> -> vector<1x64xf32>
    %c0_12 = arith.constant 0 : index
    %c0_13 = arith.constant 0 : index
    %12 = vector.load %arg5[%c0_12, %c0_13] : memref<1x64xf32, #tpu.memory_space<vmem>>, vector<1x64xf32>
    %13 = arith.addf %11, %12 : vector<1x64xf32>
    %14 = arith.negf %13 : vector<1x64xf32>
    %15 = math.exp %14 : vector<1x64xf32>
    %cst_14 = arith.constant 1.000000e+00 : f32
    %16 = vector.broadcast %cst_14 : f32 to vector<1x64xf32>
    %17 = arith.addf %16, %15 : vector<1x64xf32>
    %18 = arith.divf %16, %17 : vector<1x64xf32>
    %c0_15 = arith.constant 0 : index
    %c0_16 = arith.constant 0 : index
    %c0_17 = arith.constant 0 : index
    %19 = vector.load %arg1[%c0_15, %c0_16, %c0_17] : memref<1x64x256xf32, #tpu.memory_space<vmem>>, vector<1x64x256xf32>
    %20 = vector.shape_cast %18 : vector<1x64xf32> to vector<1x64x1xf32>
    %21 = vector.broadcast %20 : vector<1x64x1xf32> to vector<1x64x256xf32>
    %22 = arith.mulf %19, %21 : vector<1x64x256xf32>
    %c0_18 = arith.constant 0 : index
    %c0_19 = arith.constant 0 : index
    %c0_20 = arith.constant 0 : index
    %23 = vector.load %arg6[%c0_18, %c0_19, %c0_20] : memref<1x64x256xf32, #tpu.memory_space<vmem>>, vector<1x64x256xf32>
    tpu.vector_store %arg6[%c0_18, %c0_19, %c0_20], %22 {strides = array<i32>} : memref<1x64x256xf32, #tpu.memory_space<vmem>>, vector<1x64x256xf32>,
    return
  }
  func.func @transform_0(%arg0: i32) -> (i32, i32, i32) {
    %c0_i32 = arith.constant 0 : i32
    %c0_i32_0 = arith.constant 0 : i32
    %c0_i32_1 = arith.constant 0 : i32
    return %arg0, %c0_i32, %c0_i32_0 : i32, i32, i32
  }
  func.func @transform_1(%arg0: i32) -> (i32, i32) {
    %c0_i32 = arith.constant 0 : i32
    %c0_i32_0 = arith.constant 0 : i32
    %c0_i32_1 = arith.constant 0 : i32
    return %c0_i32, %c0_i32_0 : i32, i32
  }
  func.func @transform_2(%arg0: i32) -> (i32, i32) {
    %c0_i32 = arith.constant 0 : i32
    %c0_i32_0 = arith.constant 0 : i32
    %c0_i32_1 = arith.constant 0 : i32
    return %c0_i32, %c0_i32_0 : i32, i32
  }
  func.func @transform_3(%arg0: i32) -> (i32, i32) {
    %c0_i32 = arith.constant 0 : i32
    %c0_i32_0 = arith.constant 0 : i32
    %c0_i32_1 = arith.constant 0 : i32
    return %c0_i32, %c0_i32_0 : i32, i32
  }
  func.func @transform_4(%arg0: i32) -> (i32, i32) {
    %c0_i32 = arith.constant 0 : i32
    %c0_i32_0 = arith.constant 0 : i32
    %c0_i32_1 = arith.constant 0 : i32
    return %c0_i32, %c0_i32_0 : i32, i32
  }
  func.func @transform_5(%arg0: i32) -> (i32, i32, i32) {
    %c0_i32 = arith.constant 0 : i32
    %c0_i32_0 = arith.constant 0 : i32
    %c0_i32_1 = arith.constant 0 : i32
    return %arg0, %c0_i32, %c0_i32_0 : i32, i32, i32
  }
}

</mosaic_0001>

<bundles_post_ra>
// kernel: se_block.1
= control target key start
LH: loop header
LB: loop body
LE: loop exit
PB: predicated region body
PF: predicated region fallthrough
CT: control target
= control target key end

     0   :  { %s617_s18 = smov 0   ;;  %s756_s0 = inlined_call_operand.vmem [shape: f32[2,64,256], index: 0, kind: input, shape index: {}]   ;;  %s757_s1 = inlined_call_operand.vmem [shape: f32[64,4], index: 1, kind: input, shape index: {}]   ;;  %s758_s2 = inlined_call_operand.vmem [shape: f32[1,4], index: 2, kind: input, shape index: {}]   ;;  %s759_s3 = inlined_call_operand.vmem [shape: f32[4,64], index: 3, kind: input, shape index: {}]   ;;  %s760_s4 = inlined_call_operand.vmem [shape: f32[1,64], index: 4, kind: input, shape index: {}]   ;;  %s761_s5 = inlined_call_operand.vmem [shape: f32[2,64,256], index: 5, kind: output, shape index: {}]  }
   0x1 LB: > { %s537_s19 = sadd.s32 4294967295, %s584_s18   ;;  %p541_p0 = scmp.ge.s32.totalorder %s584_s18, 1  ;;  %s584_s18 = sphi %s617_s18, %s15_s18  }
   0x2   : > { %p187_p1 = scmp.lt.s32.totalorder %s584_s18, 3 }
   0x4   : > { %p188_p2 = pnand %p541_p0, %p187_p1 }
   0x5   : > { %p215_p3 = scmp.lt.s32.totalorder (!%p188_p2), %s537_s19, 1 }
   0x6   : > { %191 = sbr.rel (%p188_p2) target bundleno = 594 (0x252), region = 40 }
   0xb   : > { %s763_s19 = smov (!%p215_p3, %s537_s19), 1  ;;  %v287_v24 = vld [vmem:[%s757_s1 + $0x38] sm:$0xff]  ;;  %v286_v25 = vld [vmem:[%s757_s1 + $0x30] sm:$0xff]  ;;  %v586_v26 = vmov 256.0   ;;  %v285_v27 = vld [vmem:[%s757_s1 + $0x28] sm:$0xff]  ;;  %v297_v38 = vlaneseq  ;;  %vm302_vm1 = vcmask 130112  }
   0xc   : > { %s552_s20 = sshll.u32 %s763_s19, 7  ;;  %339 = vmatpush.msra.mxu0 %v287_v24  ;;  %572 = vrcp.f32 %v586_v26  ;;  %v284_v28 = vld [vmem:[%s757_s1 + $0x20] sm:$0xff]  ;;  %v283_v29 = vld [vmem:[%s757_s1 + $0x18] sm:$0xff]  ;;  %v282_v31 = vld [vmem:[%s757_s1 + $0x10] sm:$0xff]  ;;  %vm306_vm2 = vcmask 195712   ;;  %vm310_vm3 = vcmask 261312  }
   0xd   : > { %s219_s23 = scalar_lea.vmem %s756_s0, %s552_s20  ;;  %v281_v32 = vld [vmem:[%s757_s1 + $0x8] sm:$0xff]  ;;  %v280_v34 = vld [vmem:[%s757_s1] sm:$0xff]  ;;  %v298_v43 = vand.u32 127, %v297_v38  ;;  %vm314_vm4 = vcmask 326912   ;;  %vm318_vm5 = vcmask 392512   ;;  %vm322_vm6 = vcmask 458112   ;;  %s719_s26 = scalar_lea.vmem %s761_s5, %s552_s20 }
   0xe   : > { %v633_v0 = vld [vmem:[%s219_s23] sm:$0xff]  ;;  %v635_v1 = vld [vmem:[%s219_s23 + $0x8] sm:$0xff]  ;;  %v651_v9 = vld [vmem:[%s219_s23 + $0x10] sm:$0xff]  ;;  %340 = vmatpush.msra.mxu0 %v286_v25  ;;  %vm326_vm7 = vcmask 523712   ;;  %vm328_vm8 = vcmask 523264   ;;  %vm358_vm9 = vcmask 1043456  }
   0xf   : > { %v637_v2 = vld [vmem:[%s219_s23 + $0x20] sm:$0xff]  ;;  %v241_v3 = vadd.f32 %v635_v1, %v633_v0  ;;  %v641_v4 = vld [vmem:[%s219_s23 + $0x28] sm:$0xff]  ;;  %v653_v10 = vld [vmem:[%s219_s23 + $0x18] sm:$0xff]  ;;  %v300_v45 = vadd.s32 4294967288, %v298_v43  ;;  %v304_v46 = vadd.s32 4294967280, %v298_v43  ;;  %v308_v49 = vadd.s32 4294967272, %v298_v43 }
  0x10   : > { %v643_v5 = vld [vmem:[%s219_s23 + $0x40] sm:$0xff]  ;;  %v645_v6 = vld [vmem:[%s219_s23 + $0x48] sm:$0xff]  ;;  %v247_v7 = vadd.f32 %v641_v4, %v637_v2  ;;  %v655_v11 = vld [vmem:[%s219_s23 + $0x30] sm:$0xff]  ;;  %v244_v15 = vadd.f32 %v653_v10, %v651_v9  ;;  %341 = vmatpush.msra.mxu0 %v285_v27  ;;  %v312_v53 = vadd.s32 4294967264, %v298_v43  ;;  %v316_v60 = vadd.s32 4294967256, %v298_v43 }
  0x11   : > { %v253_v8 = vadd.f32 %v645_v6, %v643_v5  ;;  %242 = vadd.xlane.f32.xlu0 %v241_v3  ;;  %v657_v12 = vld [vmem:[%s219_s23 + $0x38] sm:$0xff]  ;;  %v659_v13 = vld [vmem:[%s219_s23 + $0x50] sm:$0xff]  ;;  %v669_v18 = vld [vmem:[%s219_s23 + $0x60] sm:$0xff]  ;;  %vm354_vm10 = vcmask 31744  }
  0x12   : > { %248 = vadd.xlane.f32.xlu1 %v247_v7  ;;  %v661_v14 = vld [vmem:[%s219_s23 + $0x58] sm:$0xff]  ;;  %v250_v16 = vadd.f32 %v657_v12, %v655_v11  ;;  %v671_v19 = vld [vmem:[%s219_s23 + $0x68] sm:$0xff]  ;;  %v673_v20 = vld [vmem:[%s219_s23 + $0x70] sm:$0xff]  ;;  %342 = vmatpush.msra.mxu0 %v284_v28  ;;  %v573_v30 = vpop.eup %572 }
  0x13   : > { %254 = vadd.xlane.f32.xlu2 %v253_v8  ;;  %v256_v17 = vadd.f32 %v661_v14, %v659_v13  ;;  %v675_v21 = vld [vmem:[%s219_s23 + $0x78] sm:$0xff]  ;;  %v259_v22 = vadd.f32 %v671_v19, %v669_v18  ;;  %v266_v33 = vmul.f32 256.0, %v573_v30  ;;  %vm270_vm0 = vweird.f32 %v573_v30 }
  0x14   : > { %v262_v23 = vadd.f32 %v675_v21, %v673_v20  ;;  %343 = vmatpush.msra.mxu0 %v283_v29  ;;  %v320_v8 = vadd.s32 4294967248, %v298_v43 }
  0x15   : > { %v267_v35 = vsub.f32 1.0, %v266_v33 }
  0x16   : > { %344 = vmatpush.msra.mxu0 %v282_v31  ;;  %v352_v31 = vld [vmem:[%s759_s3] sm:$0xf] }
  0x17   : > { %v268_v36 = vmul.f32 %v573_v30, %v267_v35  ;;  %547 = vmatpush.msk.msra.mxu1 %vm358_vm9, %v352_v31 }
  0x18   : > { %345 = vmatpush.msra.mxu0 %v281_v32  ;;  %v288_v32 = vld [vmem:[%s758_s2] sm:$0x1] }
  0x19   : > { %245 = vadd.xlane.f32.xlu0 %v244_v15  ;;  %v269_v37 = vadd.f32 %v573_v30, %v268_v36  ;;  %v403_v36 = vshrl.u32 %v297_v38, 7 }
  0x1a   : > { %251 = vadd.xlane.f32.xlu1 %v250_v16  ;;  %346 = vmatpush.msra.mxu0 %v280_v34 }
  0x1b   : > { %257 = vadd.xlane.f32.xlu2 %v256_v17  ;;  %v271_v42 = vsel %vm270_vm0, %v573_v30, %v269_v37  ;;  %v324_v17 = vadd.s32 4294967240, %v298_v43  ;;  %v416_v37 = vadd.s32 16, %v403_v36 }
  0x1c   : > { %563 = vset.pattern.permute.xlu2 %v403_v36 }
  0x1d   : > { %565 = vset.pattern.permute.xlu1 %v416_v37 }
  0x21   : > { %260 = vadd.xlane.f32.xlu0 %v259_v22 }
  0x22   : > { %263 = vadd.xlane.f32.xlu1 %v262_v23 }
  0x84   : > { %v243_v39 = vpop.xlane.xlu0 %242 }
  0x85   : > { %v249_v40 = vpop.xlane.xlu1 %248  ;;  %v272_v44 = vmul.f32 %v271_v42, %v243_v39  ;;  %v410_v39 = vadd.s32 8, %v403_v36 }
  0x86   : > { %v255_v41 = vpop.xlane.xlu2 %254  ;;  %v274_v47 = vmul.f32 %v271_v42, %v249_v40  ;;  %v353_v40 = vld [vmem:[%s760_s4] sm:$0x1] }
  0x87   : > { %v299_v55 = vperm.slane %v272_v44, %v298_v43  ;;  %v276_v56 = vmul.f32 %v271_v42, %v255_v41  ;;  %564 = vset.pattern.permute.xlu0 %v410_v39 }
  0x88   : > { %v305_v58 = vperm.slane %v274_v47, %v304_v46 }
  0x89   : > { %v313_v3 = vperm.slane %v276_v56, %v312_v53  ;;  %v434_v56 = vadd.s32 40, %v403_v36 }
  0x8c   : > { %v246_v48 = vpop.xlane.xlu0 %245 }
  0x8d   : > { %v273_v50 = vmul.f32 %v271_v42, %v246_v48  ;;  %v252_v51 = vpop.xlane.xlu1 %251 }
  0x8e   : > { %v258_v52 = vpop.xlane.xlu2 %257  ;;  %v275_v54 = vmul.f32 %v271_v42, %v252_v51 }
  0x8f   : > { %v301_v57 = vperm.slane %v273_v50, %v300_v45  ;;  %v277_v61 = vmul.f32 %v271_v42, %v258_v52 }
  0x90   : > { %v309_v59 = vperm.slane %v275_v54, %v308_v49 }
  0x91   : > { %v303_v62 = vsel %vm302_vm1, %v301_v57, %v299_v55  ;;  %v317_v15 = vperm.slane %v277_v61, %v316_v60  ;;  %v422_v57 = vadd.s32 24, %v403_v36  ;;  %v440_v60 = vadd.s32 48, %v403_v36 }
  0x92   : > { %v307_v63 = vsel %vm306_vm2, %v305_v58, %v303_v62  ;;  %v446_v58 = vadd.s32 56, %v403_v36 }
  0x93   : > { %v311_v7 = vsel %vm310_vm3, %v309_v59, %v307_v63  ;;  %v428_v59 = vadd.s32 32, %v403_v36 }
  0x94   : > { %v261_v16 = vpop.xlane.xlu0 %260  ;;  %v315_v24 = vsel %vm314_vm4, %v313_v3, %v311_v7 }
  0x95   : > { %v278_v22 = vmul.f32 %v271_v42, %v261_v16  ;;  %v264_v23 = vpop.xlane.xlu1 %263  ;;  %v319_v28 = vsel %vm318_vm5, %v317_v15, %v315_v24 }
  0x96   : > { %v279_v25 = vmul.f32 %v271_v42, %v264_v23 }
  0x97   : > { %v321_v26 = vperm.slane %v278_v22, %v320_v8 }
  0x98   : > { %v325_v27 = vperm.slane %v279_v25, %v324_v17 }
  0x99   : > { %v323_v29 = vsel %vm322_vm6, %v321_v26, %v319_v28 }
  0x9a   : > { %v327_v30 = vsel %vm326_vm7, %v325_v27, %v323_v29 }
  0x9b   : > { %546 = vmatmul.msk.f32.vlgmr.msra.gmra.mxu0 %vm328_vm8, %v327_v30 }
 0x118   : > { %v348_v33 = vpop.f32.mrf.mxu0 }
 0x119   : > { %v349_v34 = vadd.f32 %v348_v33, %v288_v32 }
 0x11b   : > { %v351_v35 = vmax.f32 %v349_v34, 0.0 }
 0x11d   : > { %548 = vmatmul.msk.f32.vlgmr.msra.gmra.mxu1 %vm354_vm10, %v351_v35 }
 0x19a   : > { %v379_v41 = vpop.f32.mrf.mxu1 }
 0x19b   : > { %v380_v42 = vadd.f32 %v379_v41, %v353_v40 }
 0x19d   : > { %v549_v43 = vmul.f32 -1.442695, %v380_v42 }
 0x19f   : > { %574 = vpow2.f32 %v549_v43 }
 0x1a5   : > { %v575_v44 = vpop.eup %574 }
 0x1a6   : > { %v385_v45 = vadd.f32 1.0, %v575_v44 }
 0x1a8   : > { %576 = vrcp.f32 %v385_v45  ;;  %v397_v38 = vand.u32 2147483648, %v385_v45  ;;  %v395_v50 = vand.u32 2147483647, %v385_v45  ;;  %vm391_vm12 = vweird.f32 %v385_v45 }
 0x1aa   : > { %v398_v52 = vor.u32 1.1754944e-38, %v397_v38  ;;  %vm396_vm14 = vcmp.eq.f32.partialorder %v395_v50, 8.507059e+37 }
 0x1ae   : > { %v577_v46 = vpop.eup %576 }
 0x1af   : > { %v387_v47 = vmul.f32 %v577_v46, %v385_v45  ;;  %vm392_vm11 = vweird.f32 %v577_v46 }
 0x1b0   : > { %vm393_vm13 = vmor %vm391_vm12, %vm392_vm11 }
 0x1b1   : > { %v388_v48 = vsub.f32 1.0, %v387_v47 }
 0x1b3   : > { %v389_v49 = vmul.f32 %v577_v46, %v388_v48 }
 0x1b5   : > { %v390_v51 = vadd.f32 %v577_v46, %v389_v49 }
 0x1b7   : > { %v394_v53 = vsel %vm393_vm13, %v577_v46, %v390_v51 }
 0x1b8   : > { %v399_v54 = vsel %vm396_vm14, %v398_v52, %v394_v53 }
 0x1b9   : > { %v401_v55 = vperm.slane %v399_v54, 0 }
 0x1bb   : > { %418 = vperm.xlu1 %565, %v401_v55   ;;  %412 = vperm.xlu0 %564, %v401_v55  }
 0x1bc   : > { %406 = vperm.xlu2 %563, %v401_v55  }
 0x1c3   : > { %568 = vset.pattern.permute.xlu1 %v434_v56  ;;  %571 = vset.pattern.permute.xlu0 %v446_v58 }
 0x1c4   : > { %566 = vset.pattern.permute.xlu2 %v422_v57 }
 0x1cb   : > { %436 = vperm.xlu1 %568, %v401_v55  }
 0x1cc   : > { %424 = vperm.xlu2 %566, %v401_v55  }
 0x1d3   : > { %570 = vset.pattern.permute.xlu1 %v446_v58 }
 0x1d4   : > { %567 = vset.pattern.permute.xlu2 %v428_v59 }
 0x1db   : > { %448 = vperm.xlu1 %570, %v401_v55  }
 0x1dc   : > { %430 = vperm.xlu2 %567, %v401_v55  }
 0x1e4   : > { %569 = vset.pattern.permute.xlu2 %v440_v60 }
 0x1ec   : > { %442 = vperm.xlu2 %569, %v401_v55  }
 0x216   : > { %v407_v61 = vpop.permute.xlu2 %406 }
 0x217   : > { %v450_v62 = vmul.f32 %v407_v61, %v633_v0  ;;  %v451_v63 = vmul.f32 %v407_v61, %v635_v1 }
 0x219   : > { %466 = vst [vmem:[%s719_s26] sm:$0xff] %v450_v62 }
 0x21a   : > { %467 = vst [vmem:[%s719_s26 + $0x8] sm:$0xff] %v451_v63 }
 0x226   : > { %v425_v3 = vpop.permute.xlu2 %424 }
 0x227   : > { %v456_v7 = vmul.f32 %v425_v3, %v655_v11  ;;  %v457_v8 = vmul.f32 %v425_v3, %v657_v12 }
 0x229   : > { %472 = vst [vmem:[%s719_s26 + $0x30] sm:$0xff] %v456_v7 }
 0x22a   : > { %473 = vst [vmem:[%s719_s26 + $0x38] sm:$0xff] %v457_v8 }
 0x22d   : > { %v419_v15 = vpop.permute.xlu1 %418  ;;  %v413_v16 = vpop.permute.xlu0 %412 }
 0x22e   : > { %v454_v0 = vmul.f32 %v419_v15, %v637_v2  ;;  %v455_v1 = vmul.f32 %v419_v15, %v641_v4  ;;  %v452_v17 = vmul.f32 %v413_v16, %v651_v9  ;;  %v453_v22 = vmul.f32 %v413_v16, %v653_v10 }
 0x230   : > { %470 = vst [vmem:[%s719_s26 + $0x20] sm:$0xff] %v454_v0 }
 0x231   : > { %471 = vst [vmem:[%s719_s26 + $0x28] sm:$0xff] %v455_v1 }
 0x232   : > { %468 = vst [vmem:[%s719_s26 + $0x10] sm:$0xff] %v452_v17 }
 0x233   : > { %469 = vst [vmem:[%s719_s26 + $0x18] sm:$0xff] %v453_v22 }
 0x236   : > { %v431_v11 = vpop.permute.xlu2 %430 }
 0x237   : > { %v458_v12 = vmul.f32 %v431_v11, %v643_v5  ;;  %v459_v23 = vmul.f32 %v431_v11, %v645_v6 }
 0x239   : > { %474 = vst [vmem:[%s719_s26 + $0x40] sm:$0xff] %v458_v12 }
 0x23a   : > { %475 = vst [vmem:[%s719_s26 + $0x48] sm:$0xff] %v459_v23 }
 0x23d   : > { %v437_v2 = vpop.permute.xlu1 %436 }
 0x23e   : > { %v460_v4 = vmul.f32 %v437_v2, %v659_v13  ;;  %v461_v9 = vmul.f32 %v437_v2, %v661_v14 }
 0x240   : > { %476 = vst [vmem:[%s719_s26 + $0x50] sm:$0xff] %v460_v4 }
 0x241   : > { %477 = vst [vmem:[%s719_s26 + $0x58] sm:$0xff] %v461_v9 }
 0x246   : > { %v443_v10 = vpop.permute.xlu2 %442 }
 0x247   : > { %v462_v24 = vmul.f32 %v443_v10, %v669_v18  ;;  %v463_v25 = vmul.f32 %v443_v10, %v671_v19 }
 0x249   : > { %478 = vst [vmem:[%s719_s26 + $0x60] sm:$0xff] %v462_v24 }
 0x24a   : > { %479 = vst [vmem:[%s719_s26 + $0x68] sm:$0xff] %v463_v25 }
 0x24d   : > { %v449_v5 = vpop.permute.xlu1 %448 }
 0x24e   : > { %v464_v6 = vmul.f32 %v449_v5, %v673_v20  ;;  %v465_v26 = vmul.f32 %v449_v5, %v675_v21 }
 0x250   : > { %480 = vst [vmem:[%s719_s26 + $0x70] sm:$0xff] %v464_v6 }
 0x251   : > { %481 = vst [vmem:[%s719_s26 + $0x78] sm:$0xff] %v465_v26 }
 0x252 PF: > { %s15_s18 = sadd.s32 1, %s584_s18  }
 0x253   : > { %p12_p4 = scmp.ge.s32.totalorder %s15_s18, 4  }
 0x255   :  { %14 = sbr.rel (!%p12_p4) target bundleno = 1 (0x1), region = 70 }

</bundles_post_ra>
